<compile_context>
chip_gen: v6e
topology: v6e:2x2x1
jax: 0.10.0
libtpu: 0.0.40
codegen_flags: <defaults>
</compile_context>

<pallas_src>
import functools
import math

import jax
import jax.numpy as jnp
from jax import lax
from jax.experimental import pallas as pl
from jax.experimental.pallas import tpu as pltpu

_LANE = 128


def _fused_actor_kernel(x_ref, w1_ref, b1_ref, w2_ref, b2_ref, o_ref):
    """x @ W1_all -> +b1 -> exact GELU -> @ W2_blockdiag -> +b2 -> tanh."""
    x = x_ref[...]

    # All first layers in one MXU matmul: (bm, H) @ (H, NH_pad), f32 accumulate.
    h = jnp.dot(x.astype(w1_ref.dtype), w1_ref[...],
                preferred_element_type=jnp.float32) + b1_ref[...]

    # Exact GELU (nn.GELU() default): 0.5 * x * (1 + erf(x / sqrt(2))).
    # Kept as erf for 1e-5 parity with PyTorch; the tanh-approx variant would
    # move the transcendental to the EUP slot if the kernel becomes VALU-bound.
    inv_sqrt2 = jnp.float32(1.0 / math.sqrt(2.0))
    h = 0.5 * h * (1.0 + lax.erf(h * inv_sqrt2))

    # TODO(synk): dropout with p > 0 would need pltpu.prng_seed/prng_random_bits;
    # omitted because the module default is p = 0.0 (identity / eval mode).

    # All second layers via the block-diagonal slab:
    # (bm, NH_pad) @ (NH_pad, A_pad) writes the concatenated, lane-dense output.
    y = jnp.dot(h.astype(w2_ref.dtype), w2_ref[...],
                preferred_element_type=jnp.float32) + b2_ref[...]
    o_ref[...] = jnp.tanh(y).astype(o_ref.dtype)


def prepare_params(params, use_bf16_operands=False):
    """One-time packing of per-sub-actor PyTorch-style Linear params.

    params: list of (w1, b1, w2, b2) with shapes (H,H), (H,), (A_i,H), (A_i,).
    Returns (w1_all (H, NH_pad), b1_all (1, NH_pad), w2_all (NH_pad, A_pad),
             b2_all (1, A_pad), total_a).  Both NH = N*H and sum(A_i) are
    zero-padded up to 128-lane multiples so every tile is lane-dense.
    """
    H = params[0][0].shape[0]
    N = len(params)
    sizes = [int(w2.shape[0]) for (_, _, w2, _) in params]
    total_a = sum(sizes)
    a_pad = pl.cdiv(total_a, _LANE) * _LANE
    nh_pad = pl.cdiv(N * H, _LANE) * _LANE

    # bf16 operands restore full MXU rate and halve weight bytes on v6e/v7x;
    # biases stay f32 (added to the f32 accumulator).
    w_dtype = jnp.bfloat16 if use_bf16_operands else jnp.float32

    w1_all = jnp.zeros((H, nh_pad), jnp.float32)
    b1_all = jnp.zeros((1, nh_pad), jnp.float32)
    # Block-diagonal second layer: rows [i*H:(i+1)*H] x cols [off_i:off_i+A_i]
    # hold W2_i^T; the single matmul reproduces the per-sub-actor products and
    # the torch.cat layout simultaneously.
    w2_all = jnp.zeros((nh_pad, a_pad), jnp.float32)
    b2_all = jnp.zeros((1, a_pad), jnp.float32)

    off = 0
    for i, (w1, b1, w2, b2) in enumerate(params):
        a = sizes[i]
        w1_all = w1_all.at[:, i * H:(i + 1) * H].set(
            jnp.transpose(w1).astype(jnp.float32))
        b1_all = b1_all.at[0, i * H:(i + 1) * H].set(b1.astype(jnp.float32))
        w2_all = w2_all.at[i * H:(i + 1) * H, off:off + a].set(
            jnp.transpose(w2).astype(jnp.float32))
        b2_all = b2_all.at[0, off:off + a].set(b2.astype(jnp.float32))
        off += a

    return (w1_all.astype(w_dtype), b1_all, w2_all.astype(w_dtype), b2_all,
            total_a)


def _pick_batch_tile(B):
    # Fixed 256-row tiles amortize the ~0.35 us per-grid-step overhead and keep
    # activation tiles bounded; small batches run as one block.
    return B if B <= 256 else 256


# TODO(synk): for very large N or sum(A_i), replace the dense block-diagonal W2
# slab with a second ("arbitrary") grid axis over sub-actors that accumulates
# into a (bm, A_pad) VMEM scratch, bounding per-step weight VMEM on v7x.
@functools.partial(jax.jit, static_argnames=("total_a", "return_padded"))
def subdivided_actor_forward(world_repr, w1_all, b1_all, w2_all, b2_all, *,
                             total_a, return_padded=False):
    """Fused forward of SubdividedActor. Returns (B, sum(action_shape))."""
    B, H = world_repr.shape
    NHp = w1_all.shape[1]
    A_pad = w2_all.shape[1]

    bm = _pick_batch_tile(B)
    grid = (pl.cdiv(B, bm),)   # Pallas masks the ragged last block.

    # Explicit VMEM budget: single-buffered weights + double-buffered x / out
    # activation tiles, 1.5x headroom, clamped to [4 MiB, 100 MiB].
    w_item = jnp.dtype(w1_all.dtype).itemsize
    weight_bytes = (H * NHp + NHp * A_pad) * w_item + (NHp + A_pad) * 4
    act_bytes = 2 * (bm * H + bm * A_pad) * 4
    vmem_limit = int(1.5 * (weight_bytes + act_bytes)) + (2 << 20)
    vmem_limit = min(max(vmem_limit, 4 << 20), 100 << 20)

    # Grid-invariant weights/biases: constant index_map -> single buffer.
    def wspec(shape):
        return pl.BlockSpec(shape, lambda i: (0, 0),
                            pipeline_mode=pl.Buffered(1))

    out = pl.pallas_call(
        _fused_actor_kernel,
        out_shape=jax.ShapeDtypeStruct((B, A_pad), world_repr.dtype),
        grid_spec=pl.GridSpec(
            grid=grid,
            in_specs=[
                pl.BlockSpec((bm, H), lambda i: (i, 0)),
                wspec((H, NHp)),
                wspec((1, NHp)),
                wspec((NHp, A_pad)),
                wspec((1, A_pad)),
            ],
            out_specs=pl.BlockSpec((bm, A_pad), lambda i: (i, 0)),
        ),
        compiler_params=pltpu.CompilerParams(
            dimension_semantics=("parallel",),
            vmem_limit_bytes=vmem_limit,
        ),
    )(world_repr, w1_all, b1_all, w2_all, b2_all)

    if return_padded:
        # Lane-padded (B, A_pad) slab — lets the consumer fuse/slice and avoids
        # an extra full HBM read+write for the slice below.
        return out
    return out[:, :total_a]


def init_params(key, action_shape, hidden_size, dtype=jnp.float32):
    """Deterministic synthetic init mirroring nn.Linear's uniform(-1/sqrt(in), 1/sqrt(in))."""
    params = []
    for a in action_shape:
        key, k1, k2, k3, k4 = jax.random.split(key, 5)
        lim = 1.0 / math.sqrt(hidden_size)
        w1 = jax.random.uniform(k1, (hidden_size, hidden_size), dtype, -lim, lim)
        b1 = jax.random.uniform(k2, (hidden_size,), dtype, -lim, lim)
        w2 = jax.random.uniform(k3, (a, hidden_size), dtype, -lim, lim)
        b2 = jax.random.uniform(k4, (a,), dtype, -lim, lim)
        params.append((w1, b1, w2, b2))
    return params


def _reference_forward(world_repr, params):
    """Pure-JAX reference of the PyTorch module (for a correctness check)."""
    outs = []
    for (w1, b1, w2, b2) in params:
        h = world_repr @ w1.T + b1
        h = jax.nn.gelu(h, approximate=False)
        y = h @ w2.T + b2
        outs.append(jnp.tanh(y))
    return jnp.concatenate(outs, axis=-1)


if __name__ == "__main__":
    key = jax.random.PRNGKey(0)
    key, xk = jax.random.split(key)

    batch = 8
    hidden_size = 32
    action_shape = (3, 5, 2)   # three sub-actors with different action sizes

    world_repr = jax.random.normal(xk, (batch, hidden_size), dtype=jnp.float32)
    params = init_params(key, action_shape, hidden_size)

    # One-time weight packing (hoisted out of the forward path). f32 operands
    # here for 1e-5 parity; pass use_bf16_operands=True on v6e/v7x at scale.
    w1_all, b1_all, w2_all, b2_all, total_a = prepare_params(params)

    out = subdivided_actor_forward(
        world_repr, w1_all, b1_all, w2_all, b2_all, total_a=total_a)
    out = jax.block_until_ready(out)

    ref = _reference_forward(world_repr, params)
    assert out.shape == (batch, sum(action_shape)), out.shape
    assert jnp.allclose(out, ref, atol=1e-5, rtol=1e-5), float(
        jnp.max(jnp.abs(out - ref)))

    print("KERNEL_OK")
</pallas_src>

<mosaic_0001>
module attributes {stable_mosaic.version = 11 : i64} {
  func.func @_fused_actor_kernel(%arg0: i32, %arg1: memref<8x32xf32, #tpu.memory_space<vmem>>, %arg2: memref<32x128xf32, #tpu.memory_space<vmem>>, %arg3: memref<1x128xf32, #tpu.memory_space<vmem>>, %arg4: memref<128x128xf32, #tpu.memory_space<vmem>>, %arg5: memref<1x128xf32, #tpu.memory_space<vmem>>, %arg6: memref<8x128xf32, #tpu.memory_space<vmem>>) attributes {dimension_semantics = [#tpu.dimension_semantics<parallel>], iteration_bounds = array<i64: 1>, scalar_prefetch = 0 : i64, scratch_operands = 0 : i64, tpu.core_type = #tpu.core_type<tc>, window_params = [{transform_indices = @transform_0, window_bounds = array<i64: 8, 32>}, {pipeline_mode = #tpu.pipeline_mode<synchronous>, transform_indices = @transform_1, window_bounds = array<i64: 32, 128>}, {pipeline_mode = #tpu.pipeline_mode<synchronous>, transform_indices = @transform_2, window_bounds = array<i64: 1, 128>}, {pipeline_mode = #tpu.pipeline_mode<synchronous>, transform_indices = @transform_3, window_bounds = array<i64: 128, 128>}, {pipeline_mode = #tpu.pipeline_mode<synchronous>, transform_indices = @transform_4, window_bounds = array<i64: 1, 128>}, {transform_indices = @transform_5, window_bounds = array<i64: 8, 128>}]} {
    %c0 = arith.constant 0 : index
    %c0_0 = arith.constant 0 : index
    %0 = vector.load %arg1[%c0, %c0_0] : memref<8x32xf32, #tpu.memory_space<vmem>>, vector<8x32xf32>
    %c0_1 = arith.constant 0 : index
    %c0_2 = arith.constant 0 : index
    %1 = vector.load %arg2[%c0_1, %c0_2] : memref<32x128xf32, #tpu.memory_space<vmem>>, vector<32x128xf32>
    %cst = arith.constant dense<0.000000e+00> : vector<8x128xf32>
    %2 = tpu.matmul %0, %1, %cst {dimension_numbers = #tpu.dot_dimension_numbers<[1], [0], [0], [1], [0, 0, 1, 1], [], []>} : vector<8x32xf32>, vector<32x128xf32>, vector<8x128xf32> -> vector<8x128xf32>
    %c0_3 = arith.constant 0 : index
    %c0_4 = arith.constant 0 : index
    %3 = vector.load %arg3[%c0_3, %c0_4] : memref<1x128xf32, #tpu.memory_space<vmem>>, vector<1x128xf32>
    %4 = vector.broadcast %3 : vector<1x128xf32> to vector<8x128xf32>
    %5 = arith.addf %2, %4 : vector<8x128xf32>
    %cst_5 = arith.constant 5.000000e-01 : f32
    %6 = vector.broadcast %cst_5 : f32 to vector<8x128xf32>
    %7 = arith.mulf %6, %5 : vector<8x128xf32>
    %cst_6 = arith.constant 0.707106769 : f32
    %8 = vector.broadcast %cst_6 : f32 to vector<8x128xf32>
    %9 = arith.mulf %5, %8 : vector<8x128xf32>
    %10 = math.erf %9 : vector<8x128xf32>
    %cst_7 = arith.constant 1.000000e+00 : f32
    %11 = vector.broadcast %cst_7 : f32 to vector<8x128xf32>
    %12 = arith.addf %11, %10 : vector<8x128xf32>
    %13 = arith.mulf %7, %12 : vector<8x128xf32>
    %c0_8 = arith.constant 0 : index
    %c0_9 = arith.constant 0 : index
    %14 = vector.load %arg4[%c0_8, %c0_9] : memref<128x128xf32, #tpu.memory_space<vmem>>, vector<128x128xf32>
    %cst_10 = arith.constant dense<0.000000e+00> : vector<8x128xf32>
    %15 = tpu.matmul %13, %14, %cst_10 {dimension_numbers = #tpu.dot_dimension_numbers<[1], [0], [0], [1], [0, 0, 1, 1], [], []>} : vector<8x128xf32>, vector<128x128xf32>, vector<8x128xf32> -> vector<8x128xf32>
    %c0_11 = arith.constant 0 : index
    %c0_12 = arith.constant 0 : index
    %16 = vector.load %arg5[%c0_11, %c0_12] : memref<1x128xf32, #tpu.memory_space<vmem>>, vector<1x128xf32>
    %17 = vector.broadcast %16 : vector<1x128xf32> to vector<8x128xf32>
    %18 = arith.addf %15, %17 : vector<8x128xf32>
    %19 = math.tanh %18 : vector<8x128xf32>
    %c0_13 = arith.constant 0 : index
    %c0_14 = arith.constant 0 : index
    %20 = vector.load %arg6[%c0_13, %c0_14] : memref<8x128xf32, #tpu.memory_space<vmem>>, vector<8x128xf32>
    tpu.vector_store %arg6[%c0_13, %c0_14], %19 {strides = array<i32>} : memref<8x128xf32, #tpu.memory_space<vmem>>, vector<8x128xf32>,
    return
  }
  func.func @transform_0(%arg0: i32) -> (i32, i32) {
    %c0_i32 = arith.constant 0 : i32
    %c0_i32_0 = arith.constant 0 : i32
    return %arg0, %c0_i32 : i32, i32
  }
  func.func @transform_1(%arg0: i32) -> (i32, i32) {
    %c0_i32 = arith.constant 0 : i32
    %c0_i32_0 = arith.constant 0 : i32
    %c0_i32_1 = arith.constant 0 : i32
    return %c0_i32, %c0_i32_0 : i32, i32
  }
  func.func @transform_2(%arg0: i32) -> (i32, i32) {
    %c0_i32 = arith.constant 0 : i32
    %c0_i32_0 = arith.constant 0 : i32
    %c0_i32_1 = arith.constant 0 : i32
    return %c0_i32, %c0_i32_0 : i32, i32
  }
  func.func @transform_3(%arg0: i32) -> (i32, i32) {
    %c0_i32 = arith.constant 0 : i32
    %c0_i32_0 = arith.constant 0 : i32
    %c0_i32_1 = arith.constant 0 : i32
    return %c0_i32, %c0_i32_0 : i32, i32
  }
  func.func @transform_4(%arg0: i32) -> (i32, i32) {
    %c0_i32 = arith.constant 0 : i32
    %c0_i32_0 = arith.constant 0 : i32
    %c0_i32_1 = arith.constant 0 : i32
    return %c0_i32, %c0_i32_0 : i32, i32
  }
  func.func @transform_5(%arg0: i32) -> (i32, i32) {
    %c0_i32 = arith.constant 0 : i32
    %c0_i32_0 = arith.constant 0 : i32
    return %arg0, %c0_i32 : i32, i32
  }
}

</mosaic_0001>

<bundles_post_ra>
// kernel: subdivided_actor_forward.1
= control target key start
LH: loop header
LB: loop body
LE: loop exit
PB: predicated region body
PF: predicated region fallthrough
CT: control target
= control target key end

     0   :  { %10 = vsyncpa [#allocation3], 0  ;;  %s509_s0 = inlined_call_operand.hbm [shape: f32[8,32], index: 0, kind: input, shape index: {}]   ;;  %s510_s1 = inlined_call_operand.hbm [shape: f32[32,128], index: 1, kind: input, shape index: {}]   ;;  %s511_s2 = inlined_call_operand.vmem [shape: f32[1,128], index: 2, kind: input, shape index: {}]   ;;  %s512_s3 = inlined_call_operand.hbm [shape: f32[128,128], index: 3, kind: input, shape index: {}]   ;;  %s513_s4 = inlined_call_operand.vmem [shape: f32[1,128], index: 4, kind: input, shape index: {}]   ;;  %s514_s5 = inlined_call_operand.hbm [shape: f32[8,128], index: 5, kind: output, shape index: {}]  }
   0x1   :  { %11 = vsyncpa [#allocation6], 0 }
   0x2   :  { %12 = vsyncpa [#allocation4], 0  ;;  %s431_s18 = smov [#allocation5]  }
   0x3   :  { %s28_s19 = sshll.u32 %s431_s18, 4  ;;  %s29_s19 = int_to_ptr.vmem [resolvable:$true] %s28_s19 }
   0x4   :  { %s353_s20 = scalar_lea.vmem %s29_s19, 512  ;;  %p358_p1 = scmp.lt.s32.totalorder %s29_s19, %s29_s19 }
   0x5   :  { %p354_p0 = scmp.ne.s32.totalorder %s29_s19, %s353_s20  ;;  %p359_p2 = scmp.lt.s32.totalorder %s353_s20, %s353_s20 }
   0x7   :  { %p360_p3 = por %p359_p2, %p358_p1 }
   0x9   :  { %p361_p4 = pnand %p360_p3, %p354_p0 }
   0xb   :  { %364 = shalt.err (!%p361_p4)
}
   0xc   :  { %s432_s21 = smov 128   ;;  %s433_s22 = smov 8  }
   0xd   :  { %34 = dma.hbm_to_vmem [thread:$0]  %s510_s1, 512, %s29_s19, [#allocation6], %s432_s21, %s432_s21, %s433_s22  }
   0xe   :  { %s434_s25 = smov [#allocation2]   ;;  %s435_s27 = smov [#allocation7]  }
   0xf   :  { %s19_s26 = sshll.u32 %s434_s25, 4  ;;  %s42_s28 = sshll.u32 %s435_s27, 4  ;;  %s20_s26 = int_to_ptr.vmem [resolvable:$true] %s19_s26  ;;  %s43_s28 = int_to_ptr.vmem [resolvable:$true] %s42_s28 }
  0x10   :  { %s373_s29 = scalar_lea.vmem %s20_s26, 128  ;;  %p378_p6 = scmp.lt.s32.totalorder %s20_s26, %s20_s26 }
  0x11   :  { %p374_p5 = scmp.ne.s32.totalorder %s20_s26, %s373_s29  ;;  %p379_p7 = scmp.lt.s32.totalorder %s373_s29, %s373_s29 }
  0x13   :  { %p380_p8 = por %p379_p7, %p378_p6 }
  0x15   :  { %p381_p9 = pnand %p380_p8, %p374_p5 }
  0x17   :  { %384 = shalt.err (!%p381_p9)
}
  0x18   :  { %22 = dma.hbm_to_vmem [thread:$0]  %s509_s0, 128, %s20_s26, [#allocation3]  }
  0x19   :  { %s393_s7 = scalar_lea.vmem %s43_s28, 2048  ;;  %p398_p11 = scmp.lt.s32.totalorder %s43_s28, %s43_s28 }
  0x1a   :  { %p394_p10 = scmp.ne.s32.totalorder %s43_s28, %s393_s7  ;;  %p399_p12 = scmp.lt.s32.totalorder %s393_s7, %s393_s7 }
  0x1c   :  { %p400_p13 = por %p399_p12, %p398_p11 }
  0x1e   :  { %p401_p0 = pnand %p400_p13, %p394_p10 }
  0x20   :  { %404 = shalt.err (!%p401_p0)
}
  0x21   :  { %48 = dma.hbm_to_vmem [thread:$0]  %s512_s3, 2048, %s43_s28, [#allocation6], %s432_s21, %s432_s21, %s433_s22  }
  0x22   :  { %425 = dma.done.wait [#allocation3], 128  }
  0x23   :  { %426 = vsyncadd [#allocation3], 4294967168 }
  0x24   :  { %427 = dma.done.wait [#allocation6], 2560  }
  0x25   :  { %428 = vsyncadd [#allocation6], 4294964736  ;;  %v436_v0 = vmov 0.0   ;;  %vm437_vm0 = vmmov 0   ;;  %v64_v1 = vld [vmem:[#allocation5 + $0x18] sm:$0xff]  ;;  %v63_v2 = vld [vmem:[#allocation5 + $0x10] sm:$0xff] }
  0x26   :  { %287 = vmatprep.subr.mxu0 %v436_v0  ;;  %295 = vmatprep.mubr.msk.f32.mxu0 %vm437_vm0, %v436_v0  ;;  %v166_v3 = vld [vmem:[#allocation7 + $0x78] sm:$0xff]  ;;  %v62_v4 = vld [vmem:[#allocation5 + $0x8] sm:$0xff]  ;;  %v165_v5 = vld [vmem:[#allocation7 + $0x70] sm:$0xff]  ;;  %vm72_vm1 = vcmask 261120   ;;  %s438_s11 = smov [#allocation8]  }
  0x27   :  { %298 = vmatprep.subr.mxu1 %v436_v0  ;;  %330 = vmatprep.mubr.msk.f32.mxu1 %vm437_vm0, %v436_v0  ;;  %v164_v6 = vld [vmem:[#allocation7 + $0x68] sm:$0xff]  ;;  %v61_v7 = vld [vmem:[#allocation5] sm:$0xff]  ;;  %v60_v8 = vld [vmem:[#allocation2] sm:$0xff] }
  0x28   :  { %288 = vmatpush3.msra.mxu0 %v64_v1  ;;  %299 = vmatpush3.msra.mxu1 %v166_v3  ;;  %v163_v9 = vld [vmem:[#allocation7 + $0x60] sm:$0xff]  ;;  %v162_v10 = vld [vmem:[#allocation7 + $0x58] sm:$0xff]  ;;  %v161_v11 = vld [vmem:[#allocation7 + $0x50] sm:$0xff] }
  0x29   :  { %289 = vmatprep.subr.mxu0 %v436_v0  ;;  %300 = vmatprep.subr.mxu1 %v436_v0  ;;  %v160_v12 = vld [vmem:[#allocation7 + $0x48] sm:$0xff]  ;;  %v159_v13 = vld [vmem:[#allocation7 + $0x40] sm:$0xff]  ;;  %v158_v14 = vld [vmem:[#allocation7 + $0x38] sm:$0xff] }
  0x2a   :  { %290 = vmatpush3.msra.mxu0 %v63_v2  ;;  %301 = vmatpush3.msra.mxu1 %v165_v5  ;;  %v157_v15 = vld [vmem:[#allocation7 + $0x30] sm:$0xff]  ;;  %v156_v16 = vld [vmem:[#allocation7 + $0x28] sm:$0xff]  ;;  %v155_v17 = vld [vmem:[#allocation7 + $0x20] sm:$0xff] }
  0x2b   :  { %291 = vmatprep.subr.mxu0 %v436_v0  ;;  %302 = vmatprep.subr.mxu1 %v436_v0  ;;  %v154_v18 = vld [vmem:[#allocation7 + $0x18] sm:$0xff]  ;;  %v153_v19 = vld [vmem:[#allocation7 + $0x10] sm:$0xff]  ;;  %v152_v20 = vld [vmem:[#allocation7 + $0x8] sm:$0xff] }
  0x2c   :  { %292 = vmatpush3.msra.mxu0 %v62_v4  ;;  %303 = vmatpush3.msra.mxu1 %v164_v6  ;;  %v151_v21 = vld [vmem:[#allocation7] sm:$0xff]  ;;  %v262_v22 = vld [vmem:[%s511_s2] ss:$0 sm:$0xff]  ;;  %s252_s2 = sshll.u32 %s438_s11, 4  ;;  %s253_s2 = int_to_ptr.vmem [resolvable:$true] %s252_s2 }
  0x2d   :  { %293 = vmatprep.subr.mxu0 %v436_v0  ;;  %304 = vmatprep.subr.mxu1 %v436_v0  ;;  %v264_v31 = vld [vmem:[%s513_s4] ss:$0 sm:$0xff]  ;;  %s405_s12 = scalar_lea.vmem %s253_s2, 128  ;;  %p410_p2 = scmp.lt.s32.totalorder %s253_s2, %s253_s2 }
  0x2e   :  { %294 = vmatpush3.msra.mxu0 %v61_v7  ;;  %305 = vmatpush3.msra.mxu1 %v163_v9  ;;  %p406_p1 = scmp.ne.s32.totalorder %s253_s2, %s405_s12  ;;  %p411_p3 = scmp.lt.s32.totalorder %s405_s12, %s405_s12 }
  0x2f   :  { %296 = vmatmul.mubr.msk.f32.vlgmr.msra.gmra.mxu0 %vm72_vm1, %v60_v8  ;;  %306 = vmatprep.subr.mxu1 %v436_v0 }
  0x30   :  { %307 = vmatpush3.msra.mxu1 %v162_v10  ;;  %p412_p4 = por %p411_p3, %p410_p2 }
  0x31   :  { %308 = vmatprep.subr.mxu1 %v436_v0 }
  0x32   :  { %309 = vmatpush3.msra.mxu1 %v161_v11  ;;  %p413_p5 = pnand %p412_p4, %p406_p1 }
  0x33   :  { %310 = vmatprep.subr.mxu1 %v436_v0 }
  0x34   :  { %311 = vmatpush3.msra.mxu1 %v160_v12 }
  0x35   :  { %312 = vmatprep.subr.mxu1 %v436_v0 }
  0x36   :  { %313 = vmatpush3.msra.mxu1 %v159_v13 }
  0x37   :  { %314 = vmatprep.subr.mxu1 %v436_v0 }
  0x38   :  { %315 = vmatpush3.msra.mxu1 %v158_v14 }
  0x39   :  { %316 = vmatprep.subr.mxu1 %v436_v0 }
  0x3a   :  { %317 = vmatpush3.msra.mxu1 %v157_v15 }
  0x3b   :  { %318 = vmatprep.subr.mxu1 %v436_v0 }
  0x3c   :  { %319 = vmatpush3.msra.mxu1 %v156_v16 }
  0x3d   :  { %320 = vmatprep.subr.mxu1 %v436_v0 }
  0x3e   :  { %321 = vmatpush3.msra.mxu1 %v155_v17 }
  0x3f   :  { %322 = vmatprep.subr.mxu1 %v436_v0 }
  0x40   :  { %323 = vmatpush3.msra.mxu1 %v154_v18 }
  0x41   :  { %324 = vmatprep.subr.mxu1 %v436_v0 }
  0x42   :  { %325 = vmatpush3.msra.mxu1 %v153_v19 }
  0x43   :  { %326 = vmatprep.subr.mxu1 %v436_v0 }
  0x44   :  { %327 = vmatpush3.msra.mxu1 %v152_v20 }
  0x45   :  { %328 = vmatprep.subr.mxu1 %v436_v0 }
  0x46   :  { %329 = vmatpush3.msra.mxu1 %v151_v21 }
  0xef   :  { %v142_v23 = vpop.f32.mrf.mxu0 }
  0xf0   :  { %v143_v24 = vadd.f32 %v262_v22, %v142_v23 }
  0xf1   :  { %v297_v25 = vpop.f32.mrf.mxu0 }
  0xf2   :  { %v147_v26 = vmul.f32 0.70710677, %v143_v24  ;;  %v146_v28 = vmul.f32 0.5, %v143_v24 }
  0xf4   :  { %341 = verf.f32 %v147_v26 }
 0x101   :  { %v342_v27 = vpop.eup %341 }
 0x102   :  { %v149_v29 = vadd.f32 1.0, %v342_v27 }
 0x104   :  { %v150_v30 = vmul.f32 %v149_v29, %v146_v28 }
 0x106   :  { %331 = vmatmul.mubr.f32.vlgmr.msra.gmra.mxu1 %v150_v30 }
 0x1c6   :  { %v240_v32 = vpop.f32.mrf.mxu1 }
 0x1c7   :  { %v241_v33 = vadd.f32 %v264_v31, %v240_v32 }
 0x1c8   :  { %v332_v34 = vpop.f32.mrf.mxu1 }
 0x1c9   :  { %343 = vtanh.f32 %v241_v33 }
 0x1d6   :  { %v344_v35 = vpop.eup %343 }
 0x1d7   :  { %245 = vst [vmem:[#allocation8] sm:$0xff] %v344_v35 }
 0x1d8   :  { %416 = shalt.err (!%p413_p5)
}
 0x1d9   :  { %255 = dma.vmem_to_hbm [thread:$0]  %s253_s2, 128, %s514_s5, [#allocation4]  }
 0x1da   :  { %429 = dma.done.wait [#allocation4], 128  }
 0x1db   :  { %430 = vsyncadd [#allocation4], 4294967168 }
 0x1dc   :  { %259 = vsyncpa [#allocation3], 1 }
 0x1dd   :  { %260 = vsyncpa [#allocation6], 1 }
 0x1de   :  { %261 = vsyncpa [#allocation4], 1 }

</bundles_post_ra>
